<compile_context>
chip_gen: v5e
topology: v5e:2x2
jax: 0.10.0
libtpu: 0.0.40
codegen_flags: <defaults>
</compile_context>

<pallas_src>
import functools

import jax
import jax.numpy as jnp
from jax.experimental import pallas as pl
from jax.experimental.pallas import tpu as pltpu


def _relation_head_kernel(code_ref, text_ref, wd_ref, bd_ref, wo_ref, bo_ref,
                          out_ref, code_acc, text_acc, *, inv_seq):
    # code_ref/text_ref: (TB, TS, H) native dtype
    # wd_ref: (3H, H), bd_ref: (1, H), wo_ref: (H, 2), bo_ref: (1, 2)
    # out_ref: (TB, 2)
    # code_acc/text_acc: (TB, H) f32 scratch accumulators
    s = pl.program_id(1)

    @pl.when(s == 0)
    def _init():
        code_acc[...] = jnp.zeros_like(code_acc)
        text_acc[...] = jnp.zeros_like(text_acc)

    # Accumulate sequence-sums in f32 WITHOUT materializing an f32 copy of
    # the (TB, TS, H) tile (keeps resident tile at native-dtype size).
    code_acc[...] += jnp.sum(code_ref[...], axis=1, dtype=jnp.float32)
    text_acc[...] += jnp.sum(text_ref[...], axis=1, dtype=jnp.float32)

    @pl.when(s == pl.num_programs(1) - 1)
    def _finalize():
        hsz = code_acc.shape[1]
        pool_code = code_acc[...] * inv_seq                      # (TB, H) f32
        pool_text = text_acc[...] * inv_seq                      # (TB, H) f32
        diff = jnp.abs(pool_code - pool_text)                    # (TB, H) f32

        # Decomposed concat-matmul: [pc, pt, diff] @ Wd == pc@Wd0 + pt@Wd1 + diff@Wd2
        wd = wd_ref[...].astype(jnp.float32)                     # (3H, H)
        h = (jnp.dot(pool_code, wd[0:hsz],
                     preferred_element_type=jnp.float32)
             + jnp.dot(pool_text, wd[hsz:2 * hsz],
                       preferred_element_type=jnp.float32)
             + jnp.dot(diff, wd[2 * hsz:3 * hsz],
                       preferred_element_type=jnp.float32)
             + bd_ref[...].astype(jnp.float32))                  # (TB, H)
        h = jnp.tanh(h)
        # TODO(synk): nn.Dropout omitted (identity at inference).
        logits = (jnp.dot(h, wo_ref[...].astype(jnp.float32),
                          preferred_element_type=jnp.float32)
                  + bo_ref[...].astype(jnp.float32))             # (TB, 2)
        out_ref[...] = logits.astype(out_ref.dtype)


def _largest_divisor_leq(total, target):
    b = max(1, min(total, target))
    while total % b != 0:
        b -= 1
    return b


def relation_classify_header(code_hidden, text_hidden,
                             w_dense, b_dense, w_out, b_out,
                             *, batch_block=8, seq_block=None):
    """Fused RelationClassifyHeader forward.

    code_hidden, text_hidden: (B, S, H)
    w_dense: (3H, H)   b_dense: (1, H)
    w_out:   (H, 2)    b_out:   (1, 2)
    returns logits: (B, 2)
    """
    B, S, H = code_hidden.shape
    assert text_hidden.shape == (B, S, H)
    assert w_dense.shape == (3 * H, H)
    assert b_dense.shape == (1, H)
    assert w_out.shape == (H, 2)
    assert b_out.shape == (1, 2)

    # Sublane-dense batch block (divisor of B, target 8+).
    tb = _largest_divisor_leq(B, batch_block)

    # Size the seq chunk so each input tile is a large DMA (~2 MiB target per
    # input) while the double-buffered pair of inputs stays well inside every
    # generation's scoped-VMEM budget (incl. v7x's 64 MiB physical).
    if seq_block is None:
        itemsize = jnp.dtype(code_hidden.dtype).itemsize
        seq_block = max(1, (2 * 1024 * 1024) // max(1, tb * H * itemsize))
    ts = _largest_divisor_leq(S, seq_block)

    grid = (B // tb, S // ts)

    kernel = functools.partial(_relation_head_kernel, inv_seq=1.0 / S)

    return pl.pallas_call(
        kernel,
        out_shape=jax.ShapeDtypeStruct((B, 2), code_hidden.dtype),
        grid_spec=pltpu.PrefetchScalarGridSpec(
            num_scalar_prefetch=0,
            grid=grid,
            in_specs=[
                pl.BlockSpec((tb, ts, H), lambda b, s: (b, s, 0)),   # code
                pl.BlockSpec((tb, ts, H), lambda b, s: (b, s, 0)),   # text
                pl.BlockSpec((3 * H, H), lambda b, s: (0, 0)),       # dense W
                pl.BlockSpec((1, H), lambda b, s: (0, 0)),           # dense b
                pl.BlockSpec((H, 2), lambda b, s: (0, 0)),           # out W
                pl.BlockSpec((1, 2), lambda b, s: (0, 0)),           # out b
            ],
            out_specs=pl.BlockSpec((tb, 2), lambda b, s: (b, 0)),
            scratch_shapes=[
                pltpu.VMEM((tb, H), jnp.float32),   # code sum accumulator
                pltpu.VMEM((tb, H), jnp.float32),   # text sum accumulator
            ],
        ),
        compiler_params=pltpu.CompilerParams(
            dimension_semantics=("parallel", "arbitrary"),
            vmem_limit_bytes=64 * 1024 * 1024,
        ),
    )(code_hidden, text_hidden, w_dense, b_dense, w_out, b_out)


if __name__ == "__main__":
    key = jax.random.PRNGKey(0)
    B, S, H = 2, 8, 32
    k1, k2, k3, k4, k5, k6 = jax.random.split(key, 6)

    code = jax.random.normal(k1, (B, S, H), dtype=jnp.float32)
    text = jax.random.normal(k2, (B, S, H), dtype=jnp.float32)
    w_dense = jax.random.normal(k3, (3 * H, H), dtype=jnp.float32) * 0.05
    b_dense = jax.random.normal(k4, (1, H), dtype=jnp.float32) * 0.05
    w_out = jax.random.normal(k5, (H, 2), dtype=jnp.float32) * 0.05
    b_out = jax.random.normal(k6, (1, 2), dtype=jnp.float32) * 0.05

    out = relation_classify_header(code, text, w_dense, b_dense, w_out, b_out)
    out = jax.block_until_ready(out)

    # Pure-JAX reference of the PyTorch forward (dropout = identity).
    pool_code = jnp.mean(code, axis=1)
    pool_text = jnp.mean(text, axis=1)
    diff = jnp.abs(pool_code - pool_text)
    concat = jnp.concatenate([pool_code, pool_text, diff], axis=1)
    ref = jnp.tanh(concat @ w_dense + b_dense) @ w_out + b_out

    assert out.shape == (B, 2)
    assert jnp.allclose(out, ref, atol=1e-4, rtol=1e-4)

    print("KERNEL_OK")
</pallas_src>

<mosaic_0001>
module attributes {stable_mosaic.version = 11 : i64} {
  func.func @_relation_head_kernel(%arg0: i32, %arg1: i32, %arg2: memref<2x8x32xf32, #tpu.memory_space<vmem>>, %arg3: memref<2x8x32xf32, #tpu.memory_space<vmem>>, %arg4: memref<96x32xf32, #tpu.memory_space<vmem>>, %arg5: memref<1x32xf32, #tpu.memory_space<vmem>>, %arg6: memref<32x2xf32, #tpu.memory_space<vmem>>, %arg7: memref<1x2xf32, #tpu.memory_space<vmem>>, %arg8: memref<2x2xf32, #tpu.memory_space<vmem>>, %arg9: memref<2x32xf32, #tpu.memory_space<vmem>>, %arg10: memref<2x32xf32, #tpu.memory_space<vmem>>) attributes {dimension_semantics = [#tpu.dimension_semantics<parallel>, #tpu.dimension_semantics<arbitrary>], iteration_bounds = array<i64: 1, 1>, scalar_prefetch = 0 : i64, scratch_operands = 2 : i64, tpu.core_type = #tpu.core_type<tc>, window_params = [{transform_indices = @transform_0, window_bounds = array<i64: 2, 8, 32>}, {transform_indices = @transform_1, window_bounds = array<i64: 2, 8, 32>}, {pipeline_mode = #tpu.pipeline_mode<synchronous>, transform_indices = @transform_2, window_bounds = array<i64: 96, 32>}, {pipeline_mode = #tpu.pipeline_mode<synchronous>, transform_indices = @transform_3, window_bounds = array<i64: 1, 32>}, {pipeline_mode = #tpu.pipeline_mode<synchronous>, transform_indices = @transform_4, window_bounds = array<i64: 32, 2>}, {pipeline_mode = #tpu.pipeline_mode<synchronous>, transform_indices = @transform_5, window_bounds = array<i64: 1, 2>}, {transform_indices = @transform_6, window_bounds = array<i64: 2, 2>}]} {
    %c0_i32 = arith.constant 0 : i32
    %0 = arith.cmpi eq, %arg1, %c0_i32 : i32
    %1 = arith.extui %0 : i1 to i32
    %c0_i32_0 = arith.constant 0 : i32
    %2 = arith.cmpi ne, %1, %c0_i32_0 : i32
    scf.if %2 {
      %cst_17 = arith.constant 0.000000e+00 : f32
      %16 = vector.broadcast %cst_17 : f32 to vector<2x32xf32>
      %c0_18 = arith.constant 0 : index
      %c0_19 = arith.constant 0 : index
      %17 = vector.load %arg9[%c0_18, %c0_19] : memref<2x32xf32, #tpu.memory_space<vmem>>, vector<2x32xf32>
      tpu.vector_store %arg9[%c0_18, %c0_19], %16 {strides = array<i32>} : memref<2x32xf32, #tpu.memory_space<vmem>>, vector<2x32xf32>,
      %cst_20 = arith.constant 0.000000e+00 : f32
      %18 = vector.broadcast %cst_20 : f32 to vector<2x32xf32>
      %c0_21 = arith.constant 0 : index
      %c0_22 = arith.constant 0 : index
      %19 = vector.load %arg10[%c0_21, %c0_22] : memref<2x32xf32, #tpu.memory_space<vmem>>, vector<2x32xf32>
      tpu.vector_store %arg10[%c0_21, %c0_22], %18 {strides = array<i32>} : memref<2x32xf32, #tpu.memory_space<vmem>>, vector<2x32xf32>,
    } else {
    }
    %c0 = arith.constant 0 : index
    %c0_1 = arith.constant 0 : index
    %3 = vector.load %arg9[%c0, %c0_1] : memref<2x32xf32, #tpu.memory_space<vmem>>, vector<2x32xf32>
    %c0_2 = arith.constant 0 : index
    %c0_3 = arith.constant 0 : index
    %c0_4 = arith.constant 0 : index
    %4 = vector.load %arg2[%c0_2, %c0_3, %c0_4] : memref<2x8x32xf32, #tpu.memory_space<vmem>>, vector<2x8x32xf32>
    %cst = arith.constant dense<0.000000e+00> : vector<2x32xf32>
    %5 = vector.multi_reduction <add>, %4, %cst [1] : vector<2x8x32xf32> to vector<2x32xf32>
    %6 = arith.addf %3, %5 : vector<2x32xf32>
    %c0_5 = arith.constant 0 : index
    %c0_6 = arith.constant 0 : index
    %7 = vector.load %arg9[%c0_5, %c0_6] : memref<2x32xf32, #tpu.memory_space<vmem>>, vector<2x32xf32>
    tpu.vector_store %arg9[%c0_5, %c0_6], %6 {strides = array<i32>} : memref<2x32xf32, #tpu.memory_space<vmem>>, vector<2x32xf32>,
    %c0_7 = arith.constant 0 : index
    %c0_8 = arith.constant 0 : index
    %8 = vector.load %arg10[%c0_7, %c0_8] : memref<2x32xf32, #tpu.memory_space<vmem>>, vector<2x32xf32>
    %c0_9 = arith.constant 0 : index
    %c0_10 = arith.constant 0 : index
    %c0_11 = arith.constant 0 : index
    %9 = vector.load %arg3[%c0_9, %c0_10, %c0_11] : memref<2x8x32xf32, #tpu.memory_space<vmem>>, vector<2x8x32xf32>
    %cst_12 = arith.constant dense<0.000000e+00> : vector<2x32xf32>
    %10 = vector.multi_reduction <add>, %9, %cst_12 [1] : vector<2x8x32xf32> to vector<2x32xf32>
    %11 = arith.addf %8, %10 : vector<2x32xf32>
    %c0_13 = arith.constant 0 : index
    %c0_14 = arith.constant 0 : index
    %12 = vector.load %arg10[%c0_13, %c0_14] : memref<2x32xf32, #tpu.memory_space<vmem>>, vector<2x32xf32>
    tpu.vector_store %arg10[%c0_13, %c0_14], %11 {strides = array<i32>} : memref<2x32xf32, #tpu.memory_space<vmem>>, vector<2x32xf32>,
    %c0_i32_15 = arith.constant 0 : i32
    %13 = arith.cmpi eq, %arg1, %c0_i32_15 : i32
    %14 = arith.extui %13 : i1 to i32
    %c0_i32_16 = arith.constant 0 : i32
    %15 = arith.cmpi ne, %14, %c0_i32_16 : i32
    scf.if %15 {
      %c0_17 = arith.constant 0 : index
      %c0_18 = arith.constant 0 : index
      %16 = vector.load %arg9[%c0_17, %c0_18] : memref<2x32xf32, #tpu.memory_space<vmem>>, vector<2x32xf32>
      %cst_19 = arith.constant 1.250000e-01 : f32
      %17 = vector.broadcast %cst_19 : f32 to vector<2x32xf32>
      %18 = arith.mulf %16, %17 : vector<2x32xf32>
      %c0_20 = arith.constant 0 : index
      %c0_21 = arith.constant 0 : index
      %19 = vector.load %arg10[%c0_20, %c0_21] : memref<2x32xf32, #tpu.memory_space<vmem>>, vector<2x32xf32>
      %cst_22 = arith.constant 1.250000e-01 : f32
      %20 = vector.broadcast %cst_22 : f32 to vector<2x32xf32>
      %21 = arith.mulf %19, %20 : vector<2x32xf32>
      %22 = arith.subf %18, %21 : vector<2x32xf32>
      %23 = math.absf %22 : vector<2x32xf32>
      %c0_23 = arith.constant 0 : index
      %c0_24 = arith.constant 0 : index
      %24 = vector.load %arg4[%c0_23, %c0_24] : memref<96x32xf32, #tpu.memory_space<vmem>>, vector<96x32xf32>
      %25 = vector.extract_strided_slice %24 {offsets = [0, 0], sizes = [32, 32], strides = [1, 1]} : vector<96x32xf32> to vector<32x32xf32>
      %cst_25 = arith.constant dense<0.000000e+00> : vector<2x32xf32>
      %26 = tpu.matmul %18, %25, %cst_25 {dimension_numbers = #tpu.dot_dimension_numbers<[1], [0], [0], [1], [0, 0, 1, 1], [], []>} : vector<2x32xf32>, vector<32x32xf32>, vector<2x32xf32> -> vector<2x32xf32>
      %27 = vector.extract_strided_slice %24 {offsets = [32, 0], sizes = [32, 32], strides = [1, 1]} : vector<96x32xf32> to vector<32x32xf32>
      %cst_26 = arith.constant dense<0.000000e+00> : vector<2x32xf32>
      %28 = tpu.matmul %21, %27, %cst_26 {dimension_numbers = #tpu.dot_dimension_numbers<[1], [0], [0], [1], [0, 0, 1, 1], [], []>} : vector<2x32xf32>, vector<32x32xf32>, vector<2x32xf32> -> vector<2x32xf32>
      %29 = arith.addf %26, %28 : vector<2x32xf32>
      %30 = vector.extract_strided_slice %24 {offsets = [64, 0], sizes = [32, 32], strides = [1, 1]} : vector<96x32xf32> to vector<32x32xf32>
      %cst_27 = arith.constant dense<0.000000e+00> : vector<2x32xf32>
      %31 = tpu.matmul %23, %30, %cst_27 {dimension_numbers = #tpu.dot_dimension_numbers<[1], [0], [0], [1], [0, 0, 1, 1], [], []>} : vector<2x32xf32>, vector<32x32xf32>, vector<2x32xf32> -> vector<2x32xf32>
      %32 = arith.addf %29, %31 : vector<2x32xf32>
      %c0_28 = arith.constant 0 : index
      %c0_29 = arith.constant 0 : index
      %33 = vector.load %arg5[%c0_28, %c0_29] : memref<1x32xf32, #tpu.memory_space<vmem>>, vector<1x32xf32>
      %34 = vector.broadcast %33 : vector<1x32xf32> to vector<2x32xf32>
      %35 = arith.addf %32, %34 : vector<2x32xf32>
      %36 = math.tanh %35 : vector<2x32xf32>
      %c0_30 = arith.constant 0 : index
      %c0_31 = arith.constant 0 : index
      %37 = vector.load %arg6[%c0_30, %c0_31] : memref<32x2xf32, #tpu.memory_space<vmem>>, vector<32x2xf32>
      %cst_32 = arith.constant dense<0.000000e+00> : vector<2x2xf32>
      %38 = tpu.matmul %36, %37, %cst_32 {dimension_numbers = #tpu.dot_dimension_numbers<[1], [0], [0], [1], [0, 0, 1, 1], [], []>} : vector<2x32xf32>, vector<32x2xf32>, vector<2x2xf32> -> vector<2x2xf32>
      %c0_33 = arith.constant 0 : index
      %c0_34 = arith.constant 0 : index
      %39 = vector.load %arg7[%c0_33, %c0_34] : memref<1x2xf32, #tpu.memory_space<vmem>>, vector<1x2xf32>
      %40 = vector.broadcast %39 : vector<1x2xf32> to vector<2x2xf32>
      %41 = arith.addf %38, %40 : vector<2x2xf32>
      %c0_35 = arith.constant 0 : index
      %c0_36 = arith.constant 0 : index
      %42 = vector.load %arg8[%c0_35, %c0_36] : memref<2x2xf32, #tpu.memory_space<vmem>>, vector<2x2xf32>
      tpu.vector_store %arg8[%c0_35, %c0_36], %41 {strides = array<i32>} : memref<2x2xf32, #tpu.memory_space<vmem>>, vector<2x2xf32>,
    } else {
    }
    return
  }
  func.func @transform_0(%arg0: i32, %arg1: i32) -> (i32, i32, i32) {
    %c0_i32 = arith.constant 0 : i32
    %c0_i32_0 = arith.constant 0 : i32
    return %arg0, %arg1, %c0_i32 : i32, i32, i32
  }
  func.func @transform_1(%arg0: i32, %arg1: i32) -> (i32, i32, i32) {
    %c0_i32 = arith.constant 0 : i32
    %c0_i32_0 = arith.constant 0 : i32
    return %arg0, %arg1, %c0_i32 : i32, i32, i32
  }
  func.func @transform_2(%arg0: i32, %arg1: i32) -> (i32, i32) {
    %c0_i32 = arith.constant 0 : i32
    %c0_i32_0 = arith.constant 0 : i32
    %c0_i32_1 = arith.constant 0 : i32
    return %c0_i32, %c0_i32_0 : i32, i32
  }
  func.func @transform_3(%arg0: i32, %arg1: i32) -> (i32, i32) {
    %c0_i32 = arith.constant 0 : i32
    %c0_i32_0 = arith.constant 0 : i32
    %c0_i32_1 = arith.constant 0 : i32
    return %c0_i32, %c0_i32_0 : i32, i32
  }
  func.func @transform_4(%arg0: i32, %arg1: i32) -> (i32, i32) {
    %c0_i32 = arith.constant 0 : i32
    %c0_i32_0 = arith.constant 0 : i32
    %c0_i32_1 = arith.constant 0 : i32
    return %c0_i32, %c0_i32_0 : i32, i32
  }
  func.func @transform_5(%arg0: i32, %arg1: i32) -> (i32, i32) {
    %c0_i32 = arith.constant 0 : i32
    %c0_i32_0 = arith.constant 0 : i32
    %c0_i32_1 = arith.constant 0 : i32
    return %c0_i32, %c0_i32_0 : i32, i32
  }
  func.func @transform_6(%arg0: i32, %arg1: i32) -> (i32, i32) {
    %c0_i32 = arith.constant 0 : i32
    %c0_i32_0 = arith.constant 0 : i32
    return %arg0, %c0_i32 : i32, i32
  }
}

</mosaic_0001>

<bundles_post_ra>
// kernel: tpu_custom_call.1
= control target key start
LH: loop header
LB: loop body
LE: loop exit
PB: predicated region body
PF: predicated region fallthrough
CT: control target
= control target key end

     0   :  { %vm28_vm0 = vcmask 254976   ;;  %vm34_vm1 = vcmask 261120   ;;  %v262_v6 = vmov 0.0   ;;  %s380_s0 = inlined_call_operand.vmem [shape: f32[2,8,32], index: 0, kind: input, shape index: {}]   ;;  %s381_s1 = inlined_call_operand.vmem [shape: f32[2,8,32], index: 1, kind: input, shape index: {}]   ;;  %s382_s2 = inlined_call_operand.vmem [shape: f32[96,32], index: 2, kind: input, shape index: {}]   ;;  %s383_s3 = inlined_call_operand.vmem [shape: f32[1,32], index: 3, kind: input, shape index: {}]   ;;  %s384_s4 = inlined_call_operand.vmem [shape: f32[32,2], index: 4, kind: input, shape index: {}]   ;;  %s385_s5 = inlined_call_operand.vmem [shape: f32[1,2], index: 5, kind: input, shape index: {}]   ;;  %s386_s6 = inlined_call_operand.hbm [shape: f32[2,2], index: 6, kind: output, shape index: {}]  }
   0x1   :  { %v100_v0 = vld [vmem:[%s382_s2 + $0x58] sm:$0xff]  ;;  %v99_v1 = vld [vmem:[%s382_s2 + $0x50] sm:$0xff]  ;;  %v98_v4 = vld [vmem:[%s382_s2 + $0x48] sm:$0xff]  ;;  %29 = vst.msk [vmem:[#allocation2] sm:$0x3] %vm28_vm0, %v262_v6 }
   0x2   :  { %v96_v2 = vld [vmem:[%s382_s2 + $0x38] sm:$0xff]  ;;  %162 = vmatpush.msra.mxu2 %v100_v0  ;;  %v95_v5 = vld [vmem:[%s382_s2 + $0x30] sm:$0xff]  ;;  %v97_v8 = vld [vmem:[%s382_s2 + $0x40] sm:$0xff]  ;;  %30 = vst.msk [vmem:[#allocation3] sm:$0x3] %vm28_vm0, %v262_v6 }
   0x3   :  { %116 = vmatpush.msra.mxu0 %v96_v2  ;;  %v92_v3 = vld [vmem:[%s382_s2 + $0x18] sm:$0xff]  ;;  %v91_v7 = vld [vmem:[%s382_s2 + $0x10] sm:$0xff]  ;;  %v32_v9 = vld [vmem:[%s380_s0] sm:$0xff] }
   0x4   :  { %139 = vmatpush.msra.mxu1 %v92_v3  ;;  %163 = vmatpush.msra.mxu2 %v99_v1  ;;  %v33_v10 = vld [vmem:[%s380_s0 + $0x8] sm:$0xff]  ;;  %v35_v11 = vsel %vm34_vm1, %v32_v9, 0.0  ;;  %v58_v12 = vld [vmem:[%s381_s1] sm:$0xff] }
   0x5   :  { %117 = vmatpush.msra.mxu0 %v95_v5  ;;  %v59_v13 = vld [vmem:[%s381_s1 + $0x8] sm:$0xff]  ;;  %v36_v14 = vrot.slane %v35_v11, 4  ;;  %v42_v15 = vsel %vm34_vm1, %v33_v10, 0.0  ;;  %v60_v16 = vsel %vm34_vm1, %v58_v12, 0.0  ;;  %v93_v23 = vld [vmem:[%s382_s2 + $0x20] sm:$0xff] }
   0x6   :  { %140 = vmatpush.msra.mxu1 %v91_v7  ;;  %v67_v17 = vsel %vm34_vm1, %v59_v13, 0.0  ;;  %v94_v18 = vld [vmem:[%s382_s2 + $0x28] sm:$0xff]  ;;  %164 = vmatpush.msra.mxu2 %v98_v4  ;;  %v43_v20 = vrot.slane %v42_v15, 4  ;;  %v61_v21 = vrot.slane %v60_v16, 4  ;;  %v89_v24 = vld [vmem:[%s382_s2] sm:$0xff] }
   0x7   :  { %v90_v19 = vld [vmem:[%s382_s2 + $0x8] sm:$0xff]  ;;  %v68_v22 = vrot.slane %v67_v17, 4  ;;  %118 = vmatpush.msra.mxu0 %v94_v18  ;;  %v37_v25 = vadd.f32 %v36_v14, %v35_v11 }
   0x8   :  { %141 = vmatpush.msra.mxu1 %v90_v19 }
   0x9   :  { %11 = vsyncpa [#allocation5], 0  ;;  %165 = vmatpush.msra.mxu2 %v97_v8  ;;  %v44_v26 = vadd.f32 %v43_v20, %v42_v15  ;;  %v62_v27 = vadd.f32 %v61_v21, %v60_v16  ;;  %v69_v28 = vadd.f32 %v68_v22, %v67_v17  ;;  %119 = vmatpush.msra.mxu0 %v93_v23  ;;  %v38_v29 = vrot.slane %v37_v25, 2  ;;  %v31_v42 = vld [vmem:[#allocation2] sm:$0x3]  ;;  %v180_v57 = vld [vmem:[%s384_s4 + $0x18] sm:$0xff] }
   0xa   :  { %142 = vmatpush.msra.mxu1 %v89_v24  ;;  %vm51_vm2 = vcmask 1041409   ;;  %v57_v44 = vld [vmem:[#allocation3] sm:$0x3]  ;;  %200 = vmatpush.msra.mxu3 %v180_v57  ;;  %v179_v58 = vld [vmem:[%s384_s4 + $0x10] sm:$0xff]  ;;  %v178_v59 = vld [vmem:[%s384_s4 + $0x8] sm:$0xff]  ;;  %s217_s17 = sshll.u32 %s386_s6, 4  ;;  %s218_s17 = int_to_ptr.hbm [resolvable:$true] %s217_s17 }
   0xb   :  { %v45_v30 = vrot.slane %v44_v26, 2  ;;  %v63_v31 = vrot.slane %v62_v27, 2  ;;  %v70_v32 = vrot.slane %v69_v28, 2  ;;  %v39_v33 = vadd.f32 %v38_v29, %v37_v25  ;;  %v177_v60 = vld [vmem:[%s384_s4] sm:$0xff]  ;;  %s263_s4 = smov [#allocation4]  }
   0xc   :  { %201 = vmatpush.msra.mxu3 %v179_v58  ;;  %v232_v0 = vld [vmem:[%s383_s3] ss:$0 sm:$0xff]  ;;  %s215_s14 = sshll.u32 %s263_s4, 4  ;;  %vm208_vm3 = vcmask 9216   ;;  %s216_s14 = int_to_ptr.vmem [resolvable:$true] %s215_s14 }
   0xd   :  { %v46_v34 = vadd.f32 %v45_v30, %v44_v26  ;;  %v64_v35 = vadd.f32 %v63_v31, %v62_v27  ;;  %v71_v36 = vadd.f32 %v70_v32, %v69_v28  ;;  %v40_v37 = vrot.slane %v39_v33, 1  ;;  %v233_v5 = vld [vmem:[%s385_s5] ss:$0 sm:$0xff] }
   0xe   :  { %202 = vmatpush.msra.mxu3 %v178_v59 }
   0xf   :  { %v47_v38 = vrot.slane %v46_v34, 1  ;;  %v65_v39 = vrot.slane %v64_v35, 1  ;;  %v72_v40 = vrot.slane %v71_v36, 1  ;;  %v41_v41 = vadd.f32 %v40_v37, %v39_v33 }
  0x10   :  { %203 = vmatpush.msra.mxu3 %v177_v60 }
  0x11   :  { %v48_v43 = vadd.f32 %v47_v38, %v46_v34  ;;  %v66_v45 = vadd.f32 %v65_v39, %v64_v35  ;;  %v73_v46 = vadd.f32 %v72_v40, %v71_v36 }
  0x13   :  { %v52_v47 = vsel %vm51_vm2, %v48_v43, %v41_v41  ;;  %v76_v48 = vsel %vm51_vm2, %v73_v46, %v66_v45 }
  0x14   :  { %v54_v49 = vadd.f32 %v52_v47, %v31_v42  ;;  %v78_v50 = vadd.f32 %v76_v48, %v57_v44 }
  0x16   :  { %56 = vst.msk [vmem:[#allocation2] sm:$0x3] %vm28_vm0, %v54_v49 }
  0x17   :  { %79 = vst.msk [vmem:[#allocation3] sm:$0x3] %vm28_vm0, %v78_v50 }
  0x1d   :  { %v83_v51 = vld [vmem:[#allocation2] sm:$0x3] }
  0x1e   :  { %v84_v52 = vmul.f32 0.125, %v83_v51  ;;  %v85_v53 = vld [vmem:[#allocation3] sm:$0x3] }
  0x1f   :  { %v86_v54 = vmul.f32 0.125, %v85_v53 }
  0x20   :  { %227 = vmatmul.msk.f32.vlgmr.msra.gmra.mxu1 %vm34_vm1, %v84_v52 }
  0x21   :  { %v87_v55 = vsub.f32 %v84_v52, %v86_v54  ;;  %226 = vmatmul.msk.f32.vlgmr.msra.gmra.mxu0 %vm34_vm1, %v86_v54 }
  0x23   :  { %v88_v56 = vand.u32 2147483647, %v87_v55 }
  0x25   :  { %228 = vmatmul.msk.f32.vlgmr.msra.gmra.mxu2 %vm34_vm1, %v88_v56 }
  0x9d   :  { %v144_v62 = vpop.f32.mrf.mxu1 }
  0x9e   :  { %v121_v61 = vpop.f32.mrf.mxu0 }
  0x9f   :  { %v145_v63 = vadd.f32 %v144_v62, %v121_v61 }
  0xa8   :  { %v167_v1 = vpop.f32.mrf.mxu2 }
  0xa9   :  { %v170_v2 = vadd.f32 %v167_v1, %v145_v63 }
  0xab   :  { %v175_v3 = vadd.f32 %v232_v0, %v170_v2 }
  0xad   :  { %234 = vtanh.f32 %v175_v3 }
  0xb3   :  { %v235_v4 = vpop.eup %234 }
  0xb4   :  { %229 = vmatmul.msk.f32.vlgmr.msra.gmra.mxu3 %vm34_vm1, %v235_v4 }
 0x137   :  { %v205_v6 = vpop.f32.mrf.mxu3 }
 0x138   :  { %v206_v7 = vadd.f32 %v233_v5, %v205_v6 }
 0x13a   :  { %209 = vst.msk [vmem:[#allocation4] sm:$0x3] %vm208_vm3, %v206_v7 }
 0x13b   :  { %220 = dma.vmem_to_hbm [thread:$0]  %s216_s14, 32, %s218_s17, [#allocation5]  }
 0x13c   :  { %260 = dma.done.wait [#allocation5], 32  }
 0x13d   :  { %261 = vsyncadd [#allocation5], 4294967264 }
 0x13e   :  { %225 = vsyncpa [#allocation5], 1 }

</bundles_post_ra>
